<compile_context>
chip_gen: v7x
topology: tpu7x:2x2x1
jax: 0.10.0
libtpu: 0.0.40
codegen_flags: <defaults>
</compile_context>

<pallas_src>
import jax
import jax.numpy as jnp
from jax.experimental import pallas as pl
from jax.experimental.pallas import tpu as pltpu


def _round_up(n, m):
    return ((n + m - 1) // m) * m


def _mlp_kernel(xu_ref, xi_ref, w0u_ref, w0i_ref, b0_ref,
                w1_ref, b1_ref, w2t_ref, b2_ref, o_ref):
    # Layer 0: split matmul replaces cat([user, item], -1) @ W0  (bf16 MXU, f32 acc)
    h0 = (jnp.dot(xu_ref[...], w0u_ref[...], preferred_element_type=jnp.float32)
          + jnp.dot(xi_ref[...], w0i_ref[...], preferred_element_type=jnp.float32)
          + b0_ref[...])
    h0 = jnp.maximum(h0, 0.0)

    # Layer 1 (bf16 MXU, f32 acc)
    h1 = jnp.dot(h0.astype(w1_ref.dtype), w1_ref[...],
                 preferred_element_type=jnp.float32) + b1_ref[...]
    h1 = jnp.maximum(h1, 0.0)                                   # (TB, H1) f32

    # Final Linear(out=1), lane-dense: contract the H1 axis of w2t (8, H1 - rows
    # replicated, MXU-native M=8) against the H1 axis of h1 (TB, H1) -> (8, TB);
    # per-row scalars land on lanes.  Bias/ReLU/sigmoid + store then run on
    # dense 128-lane vregs instead of a (TB, 1) masked column.
    h2 = jax.lax.dot_general(
        w2t_ref[...], h1, (((1,), (1,)), ((), ())),
        preferred_element_type=jnp.float32)[0:1, :]              # (1, TB)
    h2 = jnp.maximum(h2 + b2_ref[...], 0.0)   # PyTorch module applies ReLU after last Linear too
    o_ref[...] = jax.nn.sigmoid(h2).reshape(o_ref.shape)


def deep_and_cross_forward(item_index, user_index, kp, *, tile_rows=8192):
    """Embedding gather in XLA (fusion-hinted); concat-free MLP + sigmoid in one Pallas kernel."""
    user_emb = kp["user_embedding"][user_index]     # (B, dim) bf16  (cat order: user first)
    item_emb = kp["item_embedding"][item_index]     # (B, dim) bf16

    B, dim = user_emb.shape
    h0 = kp["w0_user"].shape[1]
    h1 = kp["w1"].shape[1]

    # Batch tile: multiple of 128 lanes for the dense output block; for larger
    # batches force >= 2 grid steps so both v7x TensorCores get work.
    TB = min(tile_rows, _round_up(B, 128))
    if B > 256 and pl.cdiv(B, TB) < 2:
        TB = _round_up(pl.cdiv(B, 2), 128)
    nb = pl.cdiv(B, TB)            # ragged last block; no jnp.pad copy of the activations
    grid = (nb,)

    weight_keys = ("w0_user", "w0_item", "b0", "w1", "b1", "w2t", "b2")
    weight_bytes = sum(kp[k].size * kp[k].dtype.itemsize for k in weight_keys)

    # Scoped-VMEM budget: double-buffered in/out blocks + f32 intermediates (+slack).
    vmem_est = (2 * (2 * TB * dim * 2 + TB * 4)
                + weight_bytes
                + 2 * TB * (h0 + 2 * h1 + 4) * 4)
    vmem_limit = int(min(max(vmem_est + (8 << 20), 32 << 20), 64 << 20))

    flops = 2 * B * (2 * dim * h0 + h0 * h1 + h1)
    bytes_accessed = (user_emb.size * user_emb.dtype.itemsize
                      + item_emb.size * item_emb.dtype.itemsize
                      + nb * TB * 4 + weight_bytes)

    def row_spec(cols):
        return pl.BlockSpec((TB, cols), lambda i: (i, 0))

    def resident(arr):                 # full array, same block every grid step
        return pl.BlockSpec(arr.shape, lambda i: (0, 0))

    out_blocks = pl.pallas_call(
        _mlp_kernel,
        out_shape=jax.ShapeDtypeStruct((nb, 1, TB), jnp.float32),
        grid=grid,
        in_specs=[
            row_spec(dim), row_spec(dim),
            resident(kp["w0_user"]), resident(kp["w0_item"]), resident(kp["b0"]),
            resident(kp["w1"]), resident(kp["b1"]),
            resident(kp["w2t"]), resident(kp["b2"]),
        ],
        out_specs=pl.BlockSpec((1, 1, TB), lambda i: (i, 0, 0)),
        compiler_params=pltpu.CompilerParams(
            dimension_semantics=("parallel",),
            vmem_limit_bytes=vmem_limit,
            allow_input_fusion=[True, True] + [False] * 7,
        ),
        cost_estimate=pl.CostEstimate(
            flops=flops, transcendentals=2 * B, bytes_accessed=bytes_accessed),
    )(user_emb, item_emb,
      kp["w0_user"], kp["w0_item"], kp["b0"],
      kp["w1"], kp["b1"], kp["w2t"], kp["b2"])

    # (nb, 1, TB) lane-dense blocks -> (B, 1), matching the torch output shape.
    return out_blocks.reshape(-1)[:B].reshape(B, 1)


def init_params(key, items, users, dim, layers):
    """f32 'master' params, matching the PyTorch module (W stored (in, out))."""
    ks = jax.random.split(key, 5)
    (l0_in, l0_out), (l1_in, l1_out) = layers
    assert l0_in == 2 * dim and l1_in == l0_out

    def lin(k, fan_in, fan_out):
        kw, kb = jax.random.split(k)
        bound = 1.0 / jnp.sqrt(fan_in)
        w = jax.random.uniform(kw, (fan_in, fan_out), jnp.float32, -bound, bound)
        b = jax.random.uniform(kb, (1, fan_out), jnp.float32, -bound, bound)
        return w, b

    w0, b0 = lin(ks[2], l0_in, l0_out)
    w1, b1 = lin(ks[3], l1_in, l1_out)
    w2, b2 = lin(ks[4], l1_out, 1)
    return {
        "item_embedding": jax.random.normal(ks[0], (items, dim), jnp.float32),
        "user_embedding": jax.random.normal(ks[1], (users, dim), jnp.float32),
        "w0": w0, "b0": b0,
        "w1": w1, "b1": b1,
        "w2": w2, "b2": b2,
    }


def prepare_kernel_params(p, dim):
    """One-time prep (hoisted off the forward path): split W0, bf16 MXU operands,
    transpose + replicate the 1-wide final projection."""
    return {
        "user_embedding": p["user_embedding"].astype(jnp.bfloat16),
        "item_embedding": p["item_embedding"].astype(jnp.bfloat16),
        "w0_user": p["w0"][:dim].astype(jnp.bfloat16),   # cat order: [user, item]
        "w0_item": p["w0"][dim:].astype(jnp.bfloat16),
        "b0": p["b0"],                                   # f32
        "w1": p["w1"].astype(jnp.bfloat16),
        "b1": p["b1"],                                   # f32
        "w2t": jnp.tile(p["w2"].T, (8, 1)),              # (8, h_last) f32, identical rows (MXU M=8)
        "b2": p["b2"].reshape(1, 1),                     # (1, 1) f32
    }


def _reference_forward(item_index, user_index, p):
    """Pure-JAX f32 reference mirroring the PyTorch forward."""
    x = jnp.concatenate(
        [p["user_embedding"][user_index], p["item_embedding"][item_index]], axis=-1)
    x = jnp.maximum(x @ p["w0"] + p["b0"], 0.0)
    x = jnp.maximum(x @ p["w1"] + p["b1"], 0.0)
    x = jnp.maximum(x @ p["w2"] + p["b2"], 0.0)
    return jax.nn.sigmoid(x)


if __name__ == "__main__":
    # Small config: items=100, users=50, dim=32, layers=[(64, 32), (32, 16)], batch=8
    ITEMS, USERS, DIM = 100, 50, 32
    LAYERS = [(2 * DIM, 32), (32, 16)]
    B = 8

    key = jax.random.PRNGKey(0)
    kp_key, ki, ku = jax.random.split(key, 3)
    params = init_params(kp_key, ITEMS, USERS, DIM, LAYERS)
    kparams = prepare_kernel_params(params, DIM)

    item_index = jax.random.randint(ki, (B,), 0, ITEMS)
    user_index = jax.random.randint(ku, (B,), 0, USERS)

    forward = jax.jit(deep_and_cross_forward)
    out = forward(item_index, user_index, kparams)
    out = jax.block_until_ready(out)

    ref = _reference_forward(item_index, user_index, params)
    assert out.shape == (B, 1)
    # bf16 MXU operands (f32 accumulate) -> relaxed tolerance vs f32 reference.
    assert jnp.allclose(out, ref, atol=2e-2, rtol=2e-2), (out, ref)

    print("KERNEL_OK")
</pallas_src>

<mosaic_0001>
module attributes {stable_mosaic.version = 11 : i64} {
  func.func @_mlp_kernel(%arg0: i32, %arg1: memref<128x32xbf16, #tpu.memory_space<vmem>>, %arg2: memref<128x32xbf16, #tpu.memory_space<vmem>>, %arg3: memref<32x32xbf16, #tpu.memory_space<vmem>>, %arg4: memref<32x32xbf16, #tpu.memory_space<vmem>>, %arg5: memref<1x32xf32, #tpu.memory_space<vmem>>, %arg6: memref<32x16xbf16, #tpu.memory_space<vmem>>, %arg7: memref<1x16xf32, #tpu.memory_space<vmem>>, %arg8: memref<8x16xf32, #tpu.memory_space<vmem>>, %arg9: memref<1x1xf32, #tpu.memory_space<vmem>>, %arg10: memref<1x1x128xf32, #tpu.memory_space<vmem>>) attributes {dimension_semantics = [#tpu.dimension_semantics<parallel>], iteration_bounds = array<i64: 1>, scalar_prefetch = 0 : i64, scratch_operands = 0 : i64, tpu.core_type = #tpu.core_type<tc>, window_params = [{transform_indices = @transform_0, window_bounds = array<i64: 128, 32>}, {transform_indices = @transform_1, window_bounds = array<i64: 128, 32>}, {pipeline_mode = #tpu.pipeline_mode<synchronous>, transform_indices = @transform_2, window_bounds = array<i64: 32, 32>}, {pipeline_mode = #tpu.pipeline_mode<synchronous>, transform_indices = @transform_3, window_bounds = array<i64: 32, 32>}, {pipeline_mode = #tpu.pipeline_mode<synchronous>, transform_indices = @transform_4, window_bounds = array<i64: 1, 32>}, {pipeline_mode = #tpu.pipeline_mode<synchronous>, transform_indices = @transform_5, window_bounds = array<i64: 32, 16>}, {pipeline_mode = #tpu.pipeline_mode<synchronous>, transform_indices = @transform_6, window_bounds = array<i64: 1, 16>}, {pipeline_mode = #tpu.pipeline_mode<synchronous>, transform_indices = @transform_7, window_bounds = array<i64: 8, 16>}, {pipeline_mode = #tpu.pipeline_mode<synchronous>, transform_indices = @transform_8, window_bounds = array<i64: 1, 1>}, {transform_indices = @transform_9, window_bounds = array<i64: 1, 1, 128>}]} {
    %c0 = arith.constant 0 : index
    %c0_0 = arith.constant 0 : index
    %0 = vector.load %arg1[%c0, %c0_0] : memref<128x32xbf16, #tpu.memory_space<vmem>>, vector<128x32xbf16>
    %c0_1 = arith.constant 0 : index
    %c0_2 = arith.constant 0 : index
    %1 = vector.load %arg3[%c0_1, %c0_2] : memref<32x32xbf16, #tpu.memory_space<vmem>>, vector<32x32xbf16>
    %cst = arith.constant dense<0.000000e+00> : vector<128x32xf32>
    %2 = tpu.matmul %0, %1, %cst {dimension_numbers = #tpu.dot_dimension_numbers<[1], [0], [0], [1], [0, 0, 1, 1], [], []>} : vector<128x32xbf16>, vector<32x32xbf16>, vector<128x32xf32> -> vector<128x32xf32>
    %c0_3 = arith.constant 0 : index
    %c0_4 = arith.constant 0 : index
    %3 = vector.load %arg2[%c0_3, %c0_4] : memref<128x32xbf16, #tpu.memory_space<vmem>>, vector<128x32xbf16>
    %c0_5 = arith.constant 0 : index
    %c0_6 = arith.constant 0 : index
    %4 = vector.load %arg4[%c0_5, %c0_6] : memref<32x32xbf16, #tpu.memory_space<vmem>>, vector<32x32xbf16>
    %cst_7 = arith.constant dense<0.000000e+00> : vector<128x32xf32>
    %5 = tpu.matmul %3, %4, %cst_7 {dimension_numbers = #tpu.dot_dimension_numbers<[1], [0], [0], [1], [0, 0, 1, 1], [], []>} : vector<128x32xbf16>, vector<32x32xbf16>, vector<128x32xf32> -> vector<128x32xf32>
    %6 = arith.addf %2, %5 : vector<128x32xf32>
    %c0_8 = arith.constant 0 : index
    %c0_9 = arith.constant 0 : index
    %7 = vector.load %arg5[%c0_8, %c0_9] : memref<1x32xf32, #tpu.memory_space<vmem>>, vector<1x32xf32>
    %8 = vector.broadcast %7 : vector<1x32xf32> to vector<128x32xf32>
    %9 = arith.addf %6, %8 : vector<128x32xf32>
    %cst_10 = arith.constant 0.000000e+00 : f32
    %10 = vector.broadcast %cst_10 : f32 to vector<128x32xf32>
    %11 = arith.maximumf %9, %10 : vector<128x32xf32>
    %12 = arith.truncf %11 : vector<128x32xf32> to vector<128x32xbf16>
    %c0_11 = arith.constant 0 : index
    %c0_12 = arith.constant 0 : index
    %13 = vector.load %arg6[%c0_11, %c0_12] : memref<32x16xbf16, #tpu.memory_space<vmem>>, vector<32x16xbf16>
    %cst_13 = arith.constant dense<0.000000e+00> : vector<128x16xf32>
    %14 = tpu.matmul %12, %13, %cst_13 {dimension_numbers = #tpu.dot_dimension_numbers<[1], [0], [0], [1], [0, 0, 1, 1], [], []>} : vector<128x32xbf16>, vector<32x16xbf16>, vector<128x16xf32> -> vector<128x16xf32>
    %c0_14 = arith.constant 0 : index
    %c0_15 = arith.constant 0 : index
    %15 = vector.load %arg7[%c0_14, %c0_15] : memref<1x16xf32, #tpu.memory_space<vmem>>, vector<1x16xf32>
    %16 = vector.broadcast %15 : vector<1x16xf32> to vector<128x16xf32>
    %17 = arith.addf %14, %16 : vector<128x16xf32>
    %cst_16 = arith.constant 0.000000e+00 : f32
    %18 = vector.broadcast %cst_16 : f32 to vector<128x16xf32>
    %19 = arith.maximumf %17, %18 : vector<128x16xf32>
    %c0_17 = arith.constant 0 : index
    %c0_18 = arith.constant 0 : index
    %20 = vector.load %arg8[%c0_17, %c0_18] : memref<8x16xf32, #tpu.memory_space<vmem>>, vector<8x16xf32>
    %cst_19 = arith.constant dense<0.000000e+00> : vector<8x128xf32>
    %21 = tpu.matmul %20, %19, %cst_19 {dimension_numbers = #tpu.dot_dimension_numbers<[1], [1], [0], [0], [0, 0, 1, 0], [], []>} : vector<8x16xf32>, vector<128x16xf32>, vector<8x128xf32> -> vector<8x128xf32>
    %22 = vector.extract_strided_slice %21 {offsets = [0, 0], sizes = [1, 128], strides = [1, 1]} : vector<8x128xf32> to vector<1x128xf32>
    %c0_20 = arith.constant 0 : index
    %c0_21 = arith.constant 0 : index
    %23 = vector.load %arg9[%c0_20, %c0_21] : memref<1x1xf32, #tpu.memory_space<vmem>>, vector<1x1xf32>
    %24 = vector.broadcast %23 : vector<1x1xf32> to vector<1x128xf32>
    %25 = arith.addf %22, %24 : vector<1x128xf32>
    %cst_22 = arith.constant 0.000000e+00 : f32
    %26 = vector.broadcast %cst_22 : f32 to vector<1x128xf32>
    %27 = arith.maximumf %25, %26 : vector<1x128xf32>
    %28 = arith.negf %27 : vector<1x128xf32>
    %29 = math.exp %28 : vector<1x128xf32>
    %cst_23 = arith.constant 1.000000e+00 : f32
    %30 = vector.broadcast %cst_23 : f32 to vector<1x128xf32>
    %31 = arith.addf %30, %29 : vector<1x128xf32>
    %32 = arith.divf %30, %31 : vector<1x128xf32>
    %33 = vector.shape_cast %32 : vector<1x128xf32> to vector<1x1x128xf32>
    %c0_24 = arith.constant 0 : index
    %c0_25 = arith.constant 0 : index
    %c0_26 = arith.constant 0 : index
    %34 = vector.load %arg10[%c0_24, %c0_25, %c0_26] : memref<1x1x128xf32, #tpu.memory_space<vmem>>, vector<1x1x128xf32>
    tpu.vector_store %arg10[%c0_24, %c0_25, %c0_26], %33 {strides = array<i32>} : memref<1x1x128xf32, #tpu.memory_space<vmem>>, vector<1x1x128xf32>,
    return
  }
  func.func @transform_0(%arg0: i32) -> (i32, i32) {
    %c0_i32 = arith.constant 0 : i32
    %c0_i32_0 = arith.constant 0 : i32
    return %arg0, %c0_i32 : i32, i32
  }
  func.func @transform_1(%arg0: i32) -> (i32, i32) {
    %c0_i32 = arith.constant 0 : i32
    %c0_i32_0 = arith.constant 0 : i32
    return %arg0, %c0_i32 : i32, i32
  }
  func.func @transform_2(%arg0: i32) -> (i32, i32) {
    %c0_i32 = arith.constant 0 : i32
    %c0_i32_0 = arith.constant 0 : i32
    %c0_i32_1 = arith.constant 0 : i32
    return %c0_i32, %c0_i32_0 : i32, i32
  }
  func.func @transform_3(%arg0: i32) -> (i32, i32) {
    %c0_i32 = arith.constant 0 : i32
    %c0_i32_0 = arith.constant 0 : i32
    %c0_i32_1 = arith.constant 0 : i32
    return %c0_i32, %c0_i32_0 : i32, i32
  }
  func.func @transform_4(%arg0: i32) -> (i32, i32) {
    %c0_i32 = arith.constant 0 : i32
    %c0_i32_0 = arith.constant 0 : i32
    %c0_i32_1 = arith.constant 0 : i32
    return %c0_i32, %c0_i32_0 : i32, i32
  }
  func.func @transform_5(%arg0: i32) -> (i32, i32) {
    %c0_i32 = arith.constant 0 : i32
    %c0_i32_0 = arith.constant 0 : i32
    %c0_i32_1 = arith.constant 0 : i32
    return %c0_i32, %c0_i32_0 : i32, i32
  }
  func.func @transform_6(%arg0: i32) -> (i32, i32) {
    %c0_i32 = arith.constant 0 : i32
    %c0_i32_0 = arith.constant 0 : i32
    %c0_i32_1 = arith.constant 0 : i32
    return %c0_i32, %c0_i32_0 : i32, i32
  }
  func.func @transform_7(%arg0: i32) -> (i32, i32) {
    %c0_i32 = arith.constant 0 : i32
    %c0_i32_0 = arith.constant 0 : i32
    %c0_i32_1 = arith.constant 0 : i32
    return %c0_i32, %c0_i32_0 : i32, i32
  }
  func.func @transform_8(%arg0: i32) -> (i32, i32) {
    %c0_i32 = arith.constant 0 : i32
    %c0_i32_0 = arith.constant 0 : i32
    %c0_i32_1 = arith.constant 0 : i32
    return %c0_i32, %c0_i32_0 : i32, i32
  }
  func.func @transform_9(%arg0: i32) -> (i32, i32, i32) {
    %c0_i32 = arith.constant 0 : i32
    %c0_i32_0 = arith.constant 0 : i32
    %c0_i32_1 = arith.constant 0 : i32
    return %arg0, %c0_i32, %c0_i32_0 : i32, i32, i32
  }
}

</mosaic_0001>

<bundles_post_ra>
// kernel: deep_and_cross_forward.1
= control target key start
LH: loop header
LB: loop body
LE: loop exit
PB: predicated region body
PF: predicated region fallthrough
CT: control target
= control target key end

     0   :  { %vm127_vm0 = vcmask 261120   ;;  %vm1063_vm1 = vmmov 0   ;;  %vm630_vm2 = vcmask 130048   ;;  %s1252_s3 = inlined_call_operand.vmem [shape: bf16[32,32], index: 3, kind: input, shape index: {}]   ;;  %s1253_s1 = inlined_call_operand.vmem [shape: bf16[8,32], index: 1, kind: input, shape index: {}]   ;;  %s1254_s2 = inlined_call_operand.vmem [shape: bf16[32,32], index: 2, kind: input, shape index: {}]   ;;  %s1255_s0 = inlined_call_operand.vmem [shape: bf16[8,32], index: 0, kind: input, shape index: {}]   ;;  %s1256_s5 = inlined_call_operand.vmem [shape: bf16[32,16], index: 5, kind: input, shape index: {}]   ;;  %s1257_s4 = inlined_call_operand.vmem [shape: f32[1,32], index: 4, kind: input, shape index: {}]   ;;  %s1258_s8 = inlined_call_operand.<no memory space> [shape: f32[1,1], index: 8, kind: input, shape index: {}]   ;;  %s1259_s6 = inlined_call_operand.vmem [shape: f32[1,16], index: 6, kind: input, shape index: {}]   ;;  %s1260_s7 = inlined_call_operand.vmem [shape: f32[8,16], index: 7, kind: input, shape index: {}]   ;;  %s1261_s9 = inlined_call_operand.vmem [shape: f32[1,1,128], index: 9, kind: output, shape index: {}]  }
   0x1   :  { %v1036_v0 = vld [vmem:[%s1252_s3] sm:$0xff]   ;;  %v1037_v1 = vld [vmem:[%s1252_s3 + $0x8] sm:$0xff]   ;;  %v1041_v5 = vld [vmem:[%s1253_s1 + $0x10] sm:$0xff]  }
   0x2   :  { %888 = vmatprep.subr.bf16.mxu0 %v1036_v0  ;;  %v1038_v2 = vld [vmem:[%s1253_s1] sm:$0xff]   ;;  %v1039_v4 = vld [vmem:[%s1253_s1 + $0x8] sm:$0xff]   ;;  %v1042_v7 = vld [vmem:[%s1253_s1 + $0x18] sm:$0xff]  }
   0x3   :  { %889 = vmatpush3.bf16.msra.mxu0 %v1036_v0  ;;  %892 = vmatprep.mubr.msk.bf16.mxu0 %vm127_vm0, %v1038_v2  ;;  %v1040_v3 = vld [vmem:[%s1254_s2] sm:$0xff]   ;;  %v1045_v6 = vld [vmem:[%s1254_s2 + $0x8] sm:$0xff]   ;;  %v1046_v10 = vld [vmem:[%s1253_s1 + $0x30] sm:$0xff]  }
   0x4   :  { %890 = vmatprep.subr.bf16.mxu0 %v1037_v1  ;;  %v1043_v8 = vld [vmem:[%s1253_s1 + $0x20] sm:$0xff]   ;;  %v1044_v9 = vld [vmem:[%s1253_s1 + $0x28] sm:$0xff]   ;;  %v1047_v11 = vld [vmem:[%s1253_s1 + $0x38] sm:$0xff]  }
   0x5   :  { %v1048_v12 = vld [vmem:[%s1255_s0] sm:$0xff]   ;;  %v1049_v13 = vld [vmem:[%s1255_s0 + $0x8] sm:$0xff]   ;;  %v1050_v14 = vld [vmem:[%s1255_s0 + $0x10] sm:$0xff]  }
   0x6   :  { %v1051_v15 = vld [vmem:[%s1255_s0 + $0x18] sm:$0xff]   ;;  %v1052_v16 = vld [vmem:[%s1255_s0 + $0x20] sm:$0xff]   ;;  %v1053_v17 = vld [vmem:[%s1255_s0 + $0x28] sm:$0xff]  }
   0x7   :  { %891 = vmatpush3.bf16.msra.mxu0 %v1037_v1  ;;  %v1054_v18 = vld [vmem:[%s1255_s0 + $0x30] sm:$0xff]   ;;  %v1055_v19 = vld [vmem:[%s1255_s0 + $0x38] sm:$0xff]   ;;  %v1056_v20 = vld [vmem:[%s1256_s5] sm:$0xff]  }
   0x8   :  { %908 = vmatprep.subr.bf16.mxu0 %v1040_v3  ;;  %928 = vmatprep.subr.bf16.mxu1 %v1056_v20  ;;  %v1057_v21 = vld [vmem:[%s1256_s5 + $0x8] sm:$0xff]   ;;  %v811_v22 = vld [vmem:[%s1257_s4] ss:$0 sm:$0xff]  ;;  %vm1218_vm3 = vmpackc.low %vm630_vm2, %vm630_vm2 }
   0x9   :  { %929 = vmatpush3.bf16.msra.mxu1 %v1056_v20  ;;  %v812_v20 = vld [vmem:[%s1259_s6] ss:$0 sm:$0xff] }
   0xa   :  { %893 = vmatmul.mubr.msk.bf16.vlgmr.msra.gmra.mrb[0].mxu0 %vm127_vm0, %v1039_v4  ;;  %930 = vmatprep.subr.bf16.mxu1 %v1057_v21 }
   0xb   :  { %909 = vmatpush3.bf16.msra.mxu0 %v1040_v3  ;;  %896 = vmatprep.mubr.msk.bf16.mxu0 %vm127_vm0, %v1041_v5 }
   0xc   :  { %910 = vmatprep.subr.bf16.mxu0 %v1045_v6 }
   0xd   :  { %931 = vmatpush3.bf16.msra.mxu1 %v1057_v21 }
   0xf   :  { %911 = vmatpush3.bf16.msra.mxu0 %v1045_v6 }
  0x12   :  { %897 = vmatmul.mubr.msk.bf16.gmra.mrb[4].mxu0 %vm127_vm0, %v1042_v7 }
  0x13   :  { %900 = vmatprep.mubr.msk.bf16.mxu0 %vm127_vm0, %v1043_v8 }
  0x1a   :  { %901 = vmatmul.mubr.msk.bf16.gmra.mrb[8].mxu0 %vm127_vm0, %v1044_v9 }
  0x1b   :  { %904 = vmatprep.mubr.msk.bf16.mxu0 %vm127_vm0, %v1046_v10 }
  0x22   :  { %905 = vmatmul.mubr.msk.bf16.gmra.mrb[12].mxu0 %vm127_vm0, %v1047_v11 }
  0x23   :  { %912 = vmatprep.mubr.msk.bf16.mxu0 %vm127_vm0, %v1048_v12 }
  0x2a   :  { %913 = vmatmul.mubr.msk.bf16.vlgmr.msra.gmra.mrb[0].mxu0 %vm127_vm0, %v1049_v13 }
  0x2b   :  { %916 = vmatprep.mubr.msk.bf16.mxu0 %vm127_vm0, %v1050_v14 }
  0x32   :  { %917 = vmatmul.mubr.msk.bf16.gmra.mrb[4].mxu0 %vm127_vm0, %v1051_v15  ;;  %v1062_v15 = vmov 0.0|0.0  }
  0x33   :  { %920 = vmatprep.mubr.msk.bf16.mxu0 %vm127_vm0, %v1052_v16  ;;  %983 = vmatprep.subr.bf16.mxu1 %v1062_v15  ;;  %v1064_v16 = vmov 0.0  }
  0x3a   :  { %921 = vmatmul.mubr.msk.bf16.gmra.mrb[8].mxu0 %vm127_vm0, %v1053_v17  ;;  %v1065_v17 = vmov 0  }
  0x3b   :  { %924 = vmatprep.mubr.msk.bf16.mxu0 %vm127_vm0, %v1054_v18  ;;  %1035 = vset.pattern.permute.xlu0 %v1065_v17  ;;  %v14_v18 = vstv %s1258_s8 }
  0x3c   :  { %15 = vst [vmem:[#allocation2] sm:$0x1] %v14_v18 }
  0x42   :  { %925 = vmatmul.mubr.msk.bf16.gmra.mrb[12].mxu0 %vm127_vm0, %v1055_v19 }
  0x43   :  { %v752_v19 = vld [vmem:[#allocation2] sm:$0x1] }
  0x44   :  { %755 = vperm.xlu0 %1035, %v752_v19  }
  0xc3   :  { %v756_v19 = vpop.permute.xlu0 %755 }
  0xfd   :  { %v914_v23 = vpop.f32.mrb[0].mxu0 }
  0xfe   :  { %v431_v24 = vadd.f32 %v914_v23, %v811_v22  ;;  %v359_v25 = vpop.f32.mrb[1].mxu0 }
  0xff   :  { %v429_v26 = vadd.f32 %v811_v22, %v359_v25  ;;  %v915_v27 = vpop.f32.mrb[2].mxu0 }
 0x100   :  { %v432_v28 = vadd.f32 %v915_v27, %v811_v22  ;;  %v362_v29 = vpop.f32.mrb[3].mxu0  ;;  %v447_v31 = vmax.f32 %v431_v24, 0.0 }
 0x101   :  { %v430_v30 = vadd.f32 %v811_v22, %v362_v29  ;;  %v445_v33 = vmax.f32 %v429_v26, 0.0 }
 0x102   :  { %v448_v32 = vmax.f32 %v432_v28, 0.0 }
 0x103   :  { %v446_v34 = vmax.f32 %v430_v30, 0.0 }
 0x104   :  { %v462_v35 = vpack.c.bf16 %v448_v32, %v447_v31 }
 0x105   :  { %v918_v36 = vpop.f32.mrb[4].mxu0  ;;  %v461_v37 = vpack.c.bf16 %v446_v34, %v445_v33 }
 0x106   :  { %v435_v38 = vadd.f32 %v918_v36, %v811_v22  ;;  %v375_v39 = vpop.f32.mrb[5].mxu0 }
 0x107   :  { %v433_v40 = vadd.f32 %v811_v22, %v375_v39  ;;  %v919_v41 = vpop.f32.mrb[6].mxu0  ;;  %932 = vmatprep.mubr.msk.bf16.mxu1 %vm127_vm0, %v461_v37 }
 0x108   :  { %v436_v42 = vadd.f32 %v919_v41, %v811_v22  ;;  %v378_v43 = vpop.f32.mrb[7].mxu0  ;;  %933 = vmatmul.mubr.msk.bf16.vlgmr.msra.gmra.mrb[0].mxu1 %vm127_vm0, %v462_v35  ;;  %v451_v45 = vmax.f32 %v435_v38, 0.0 }
 0x109   :  { %v434_v44 = vadd.f32 %v811_v22, %v378_v43  ;;  %v449_v47 = vmax.f32 %v433_v40, 0.0 }
 0x10a   :  { %v452_v46 = vmax.f32 %v436_v42, 0.0 }
 0x10b   :  { %v450_v48 = vmax.f32 %v434_v44, 0.0 }
 0x10c   :  { %v464_v49 = vpack.c.bf16 %v452_v46, %v451_v45 }
 0x10d   :  { %v463_v50 = vpack.c.bf16 %v450_v48, %v449_v47  ;;  %v922_v51 = vpop.f32.mrb[8].mxu0 }
 0x10e   :  { %v439_v52 = vadd.f32 %v922_v51, %v811_v22  ;;  %v391_v53 = vpop.f32.mrb[9].mxu0 }
 0x10f   :  { %v437_v54 = vadd.f32 %v811_v22, %v391_v53  ;;  %v923_v55 = vpop.f32.mrb[10].mxu0  ;;  %936 = vmatprep.mubr.msk.bf16.mxu1 %vm127_vm0, %v463_v50 }
 0x110   :  { %v440_v56 = vadd.f32 %v923_v55, %v811_v22  ;;  %v394_v57 = vpop.f32.mrb[11].mxu0  ;;  %937 = vmatmul.mubr.msk.bf16.gmra.mrb[4].mxu1 %vm127_vm0, %v464_v49  ;;  %v455_v59 = vmax.f32 %v439_v52, 0.0 }
 0x111   :  { %v438_v58 = vadd.f32 %v811_v22, %v394_v57  ;;  %v453_v61 = vmax.f32 %v437_v54, 0.0 }
 0x112   :  { %v456_v60 = vmax.f32 %v440_v56, 0.0 }
 0x113   :  { %v454_v62 = vmax.f32 %v438_v58, 0.0 }
 0x114   :  { %v466_v63 = vpack.c.bf16 %v456_v60, %v455_v59 }
 0x115   :  { %v465_v0 = vpack.c.bf16 %v454_v62, %v453_v61  ;;  %v926_v1 = vpop.f32.mrb[12].mxu0 }
 0x116   :  { %v443_v2 = vadd.f32 %v926_v1, %v811_v22  ;;  %v407_v3 = vpop.f32.mrb[13].mxu0 }
 0x117   :  { %v441_v4 = vadd.f32 %v811_v22, %v407_v3  ;;  %v927_v5 = vpop.f32.mrb[14].mxu0  ;;  %940 = vmatprep.mubr.msk.bf16.mxu1 %vm127_vm0, %v465_v0 }
 0x118   :  { %v444_v6 = vadd.f32 %v927_v5, %v811_v22  ;;  %v410_v7 = vpop.f32.mrb[15].mxu0  ;;  %941 = vmatmul.mubr.msk.bf16.gmra.mrb[8].mxu1 %vm127_vm0, %v466_v63  ;;  %v459_v9 = vmax.f32 %v443_v2, 0.0 }
 0x119   :  { %v442_v8 = vadd.f32 %v811_v22, %v410_v7  ;;  %v457_v11 = vmax.f32 %v441_v4, 0.0 }
 0x11a   :  { %v460_v10 = vmax.f32 %v444_v6, 0.0 }
 0x11b   :  { %v458_v12 = vmax.f32 %v442_v8, 0.0 }
 0x11c   :  { %v468_v13 = vpack.c.bf16 %v460_v10, %v459_v9 }
 0x11d   :  { %v467_v14 = vpack.c.bf16 %v458_v12, %v457_v11 }
 0x11f   :  { %944 = vmatprep.mubr.msk.bf16.mxu1 %vm127_vm0, %v467_v14  ;;  %v629_v14 = vld [vmem:[%s1260_s7] sm:$0xff] }
 0x120   :  { %945 = vmatmul.mubr.msk.bf16.gmra.mrb[12].mxu1 %vm127_vm0, %v468_v13 }
 0x121   :  { %980 = vmatprep.mubr.msk.f32.mxu1 %vm1063_vm1, %v1064_v16  ;;  %v758_v16 = vlaneseq }
 0x123   :  { %v759_v17 = vshrl.u32 %v758_v16, 7 }
 0x125   :  { %v760_v18 = vsub.s32 0, %v759_v17 }
 0x1db   :  { %v934_v21 = vpop.f32.mrb[0].mxu1 }
 0x1dc   :  { %v559_v22 = vadd.f32 %v934_v21, %v812_v20  ;;  %v550_v23 = vpop.f32.mrb[1].mxu1 }
 0x1dd   :  { %v551_v24 = vadd.f32 %v812_v20, %v550_v23  ;;  %v935_v25 = vpop.f32.mrb[2].mxu1 }
 0x1de   :  { %v562_v26 = vadd.f32 %v935_v25, %v812_v20  ;;  %v553_v27 = vpop.f32.mrb[3].mxu1  ;;  %v615_v29 = vmax.f32 %v559_v22, 0.0 }
 0x1df   :  { %v554_v28 = vadd.f32 %v812_v20, %v553_v27  ;;  %v613_v31 = vmax.f32 %v551_v24, 0.0 }
 0x1e0   :  { %v616_v30 = vmax.f32 %v562_v26, 0.0 }
 0x1e1   :  { %v614_v32 = vmax.f32 %v554_v28, 0.0 }
 0x1e2   :  { %v988_v33 = vpack.c.bf16 %v616_v30, %v615_v29 }
 0x1e3   :  { %v984_v35 = vpack.c.bf16 %v614_v32, %v613_v31  ;;  %v938_v36 = vpop.f32.mrb[4].mxu1 }
 0x1e4   :  { %v575_v37 = vadd.f32 %v938_v36, %v812_v20  ;;  %v566_v38 = vpop.f32.mrb[5].mxu1 }
 0x1e5   :  { %v567_v39 = vadd.f32 %v812_v20, %v566_v38  ;;  %v939_v40 = vpop.f32.mrb[6].mxu1  ;;  %986 = vmatpush3.bf16.xpose.msk.msra.mxu1 %vm1218_vm3, %v984_v35 }
 0x1e6   :  { %v578_v41 = vadd.f32 %v939_v40, %v812_v20  ;;  %v569_v42 = vpop.f32.mrb[7].mxu1  ;;  %987 = vmatprep.subr.bf16.mxu1 %v1062_v15  ;;  %v619_v44 = vmax.f32 %v575_v37, 0.0 }
 0x1e7   :  { %v570_v43 = vadd.f32 %v812_v20, %v569_v42  ;;  %v617_v46 = vmax.f32 %v567_v39, 0.0 }
 0x1e8   :  { %v620_v45 = vmax.f32 %v578_v41, 0.0 }
 0x1e9   :  { %v618_v47 = vmax.f32 %v570_v43, 0.0 }
 0x1ea   :  { %v996_v48 = vpack.c.bf16 %v620_v45, %v619_v44 }
 0x1eb   :  { %v992_v49 = vpack.c.bf16 %v618_v47, %v617_v46  ;;  %v942_v50 = vpop.f32.mrb[8].mxu1 }
 0x1ec   :  { %v591_v51 = vadd.f32 %v942_v50, %v812_v20  ;;  %v582_v52 = vpop.f32.mrb[9].mxu1 }
 0x1ed   :  { %v583_v53 = vadd.f32 %v812_v20, %v582_v52  ;;  %v943_v54 = vpop.f32.mrb[10].mxu1  ;;  %990 = vmatpush3.bf16.xpose.msk.msra.mxu1 %vm1218_vm3, %v988_v33 }
 0x1ee   :  { %v594_v55 = vadd.f32 %v943_v54, %v812_v20  ;;  %v585_v56 = vpop.f32.mrb[11].mxu1  ;;  %991 = vmatprep.subr.bf16.mxu1 %v1062_v15  ;;  %v623_v58 = vmax.f32 %v591_v51, 0.0 }
 0x1ef   :  { %v586_v57 = vadd.f32 %v812_v20, %v585_v56  ;;  %v621_v60 = vmax.f32 %v583_v53, 0.0 }
 0x1f0   :  { %v624_v59 = vmax.f32 %v594_v55, 0.0 }
 0x1f1   :  { %v622_v61 = vmax.f32 %v586_v57, 0.0 }
 0x1f2   :  { %v1004_v62 = vpack.c.bf16 %v624_v59, %v623_v58 }
 0x1f3   :  { %v1000_v63 = vpack.c.bf16 %v622_v61, %v621_v60  ;;  %v946_v0 = vpop.f32.mrb[12].mxu1 }
 0x1f4   :  { %v607_v1 = vadd.f32 %v946_v0, %v812_v20  ;;  %v598_v2 = vpop.f32.mrb[13].mxu1 }
 0x1f5   :  { %v599_v3 = vadd.f32 %v812_v20, %v598_v2  ;;  %v947_v4 = vpop.f32.mrb[14].mxu1  ;;  %994 = vmatpush3.bf16.xpose.msk.msra.mxu1 %vm1218_vm3, %v992_v49 }
 0x1f6   :  { %v610_v5 = vadd.f32 %v947_v4, %v812_v20  ;;  %v601_v6 = vpop.f32.mrb[15].mxu1  ;;  %995 = vmatprep.subr.bf16.mxu1 %v1062_v15  ;;  %v627_v8 = vmax.f32 %v607_v1, 0.0 }
 0x1f7   :  { %v602_v7 = vadd.f32 %v812_v20, %v601_v6  ;;  %v625_v10 = vmax.f32 %v599_v3, 0.0  ;;  %v761_v20 = vrot.slane %v756_v19, %v760_v18 }
 0x1f8   :  { %v628_v9 = vmax.f32 %v610_v5, 0.0 }
 0x1f9   :  { %v626_v11 = vmax.f32 %v602_v7, 0.0 }
 0x1fa   :  { %v1012_v12 = vpack.c.bf16 %v628_v9, %v627_v8 }
 0x1fb   :  { %v1008_v13 = vpack.c.bf16 %v626_v11, %v625_v10 }
 0x1fd   :  { %998 = vmatpush3.bf16.xpose.msk.msra.mxu1 %vm1218_vm3, %v996_v48 }
 0x1fe   :  { %999 = vmatprep.subr.bf16.mxu1 %v1062_v15 }
 0x205   :  { %1002 = vmatpush3.bf16.xpose.msk.msra.mxu1 %vm1218_vm3, %v1000_v63 }
 0x206   :  { %1003 = vmatprep.subr.bf16.mxu1 %v1062_v15 }
 0x20d   :  { %1006 = vmatpush3.bf16.xpose.msk.msra.mxu1 %vm1218_vm3, %v1004_v62 }
 0x20e   :  { %1007 = vmatprep.subr.bf16.mxu1 %v1062_v15 }
 0x215   :  { %1010 = vmatpush3.bf16.xpose.msk.msra.mxu1 %vm1218_vm3, %v1008_v13 }
 0x216   :  { %1011 = vmatprep.subr.bf16.mxu1 %v1062_v15 }
 0x21d   :  { %1014 = vmatpush3.bf16.xpose.msk.msra.mxu1 %vm1218_vm3, %v1012_v12 }
 0x224   :  { %981 = vmatmul.mubr.msk.f32.vlgmr.msra.gmra.mrb[16].mxu1 %vm630_vm2, %v629_v14 }
 0x2f7   :  { %v748_v21 = vpop.f32.mrb[16].mxu1 }
 0x2f8   :  { %v762_v22 = vadd.f32 %v761_v20, %v748_v21  ;;  %v982_v23 = vpop.f32.mrb[17].mxu1 }
 0x2fa   :  { %v763_v24 = vmax.f32 %v762_v22, 0.0 }
 0x2fc   :  { %v840_v25 = vmul.f32 -1.442695, %v763_v24 }
 0x2fe   :  { %1058 = vpow2.f32 %v840_v25 }
 0x308   :  { %v1059_v15 = vpop.eup %1058 }
 0x309   :  { %v767_v26 = vadd.f32 1.0, %v1059_v15 }
 0x30b   :  { %1060 = vrcp.f32 %v767_v26 }
 0x315   :  { %v1061_v27 = vpop.eup %1060 }
 0x316   :  { %770 = vst [vmem:[%s1261_s9] sm:$0x1] %v1061_v27 }

</bundles_post_ra>
